<compile_context>
chip_gen: v6e
topology: v6e:2x2x1
jax: 0.10.0
libtpu: 0.0.40
codegen_flags: <defaults>
</compile_context>

<pallas_src>
import jax
import jax.numpy as jnp
from jax.experimental import pallas as pl
from jax.experimental.pallas import tpu as pltpu

# --- problem sizes (small, lane-friendly) ------------------------------------
B, C, H, W = 2, 4, 16, 16
PATCH = 8
P = (H // PATCH) * (W // PATCH)          # 4 patches
K1 = C * PATCH * PATCH                   # 256 patch feature dim
D_VIS = 128                              # vision tower output dim
D_H = 128                                # projector hidden dim
D_LLM = 128                              # llm embedding dim
D_FF = 256                               # llm FFN hidden dim
VOCAB = 256                              # lm-head vocab size
B_PAD = 8                                # rows per image group = one (8,128) vreg


def _layernorm(x, g, b, eps=1e-5):
    mu = jnp.mean(x, axis=-1, keepdims=True)
    var = jnp.mean((x - mu) ** 2, axis=-1, keepdims=True)
    return (x - mu) * jax.lax.rsqrt(var + eps) * g + b


def lame_kernel(patches_ref, wa_ref, wb_ref, vec_ref, out_ref):
    # ---- hoisted parameter loads; static (8,128)-aligned slices (free) ------
    wa = wa_ref[...]                       # (256, 256) bf16 = lane-concat [wv | wf2]
    wb = wb_ref[...]                       # (384, 256) bf16 = [[wp1 | wp2]; wf1; wh]
    wv  = wa[:, 0:D_VIS]                   # (K1,   D_VIS)
    wf2 = wa[:, D_VIS:D_VIS + D_LLM]       # (D_FF, D_LLM)
    wp1 = wb[0:D_VIS, 0:D_H]               # (D_VIS, D_H)   (1/P mean-pool folded in)
    wp2 = wb[0:D_VIS, D_H:D_H + D_LLM]     # (D_H,  D_LLM)
    wf1 = wb[D_VIS:D_VIS + D_LLM, :]       # (D_LLM, D_FF)
    wh  = wb[D_VIS + D_LLM:D_VIS + 2 * D_LLM, :]   # (D_LLM, VOCAB)

    v = vec_ref[...]                       # (8, 256) f32 packed per-feature vectors
    bv  = v[0:1, 0:D_LLM]
    bp1 = v[0:1, D_LLM:2 * D_LLM]
    bp2 = v[1:2, 0:D_LLM]
    g1  = v[1:2, D_LLM:2 * D_LLM]
    be1 = v[2:3, 0:D_LLM]
    bf2 = v[2:3, D_LLM:2 * D_LLM]
    g2  = v[3:4, 0:D_LLM]
    be2 = v[3:4, D_LLM:2 * D_LLM]
    bf1 = v[4:5, :]                        # (1, D_FF)
    bh  = v[5:6, :]                        # (1, VOCAB)

    # ---- vision tower: one stacked GEMM over all (patch, batch) rows --------
    # patches arrive bf16, patch-major: row = p * B_PAD + b -> (P*B_PAD, K1)
    pf = jnp.dot(patches_ref[...], wv,
                 preferred_element_type=jnp.float32) + bv       # (P*B_PAD, D_VIS)
    pf = jnp.maximum(pf, 0.0)
    # mean-pool over patches: P-1 adds of full (8,128) vreg-aligned slices.
    # NOTE: the 1/P scale is folded into wp1 at init.
    feat = pf[0:B_PAD, :]
    for p in range(1, P):
        feat = feat + pf[p * B_PAD:(p + 1) * B_PAD, :]          # (B_PAD, D_VIS)
    # NOTE: padded batch rows are NOT zero after +bv/ReLU; they are sliced off
    # by the wrapper, never reduced over inside the kernel.

    # ---- mm_image_projector: Linear -> GELU -> Linear (single image token) --
    h = jnp.dot(feat.astype(jnp.bfloat16), wp1,
                preferred_element_type=jnp.float32) + bp1
    h = jax.nn.gelu(h, approximate=True)                        # tanh path -> EUP
    emb = jnp.dot(h.astype(jnp.bfloat16), wp2,
                  preferred_element_type=jnp.float32) + bp2

    # ---- llm: LN -> FFN(GELU) -> residual -> LN -> LM head ------------------
    # seq length is 1, so self-attention over a single token is identity mixing
    # and is omitted.
    # TODO(synk): the real LLM is a pretrained HF AutoModelForCausalLM; a single
    # synthetic transformer-MLP block + LM head stands in for it here.
    y = _layernorm(emb, g1, be1)
    f1 = jnp.dot(y.astype(jnp.bfloat16), wf1,
                 preferred_element_type=jnp.float32) + bf1
    f1 = jax.nn.gelu(f1, approximate=True)
    f2 = jnp.dot(f1.astype(jnp.bfloat16), wf2,
                 preferred_element_type=jnp.float32) + bf2
    emb = emb + f2
    y = _layernorm(emb, g2, be2)
    # TODO(synk): with real HF weights the LM head must be gridded over VOCAB
    # (tile sized for v7x's 64 MiB VMEM, 2-deep buffering; fp8 weights are a
    # v7x-only HBM-bandwidth option).
    logits = jnp.dot(y.astype(jnp.bfloat16), wh,
                     preferred_element_type=jnp.float32) + bh
    out_ref[...] = logits                                       # (B_PAD, VOCAB)


def init_params(key):
    ks = jax.random.split(key, 6)

    def dense(k, fan_in, fan_out):
        return jax.random.normal(k, (fan_in, fan_out), jnp.float32) * (fan_in ** -0.5)

    wv  = dense(ks[0], K1, D_VIS)
    wp1 = dense(ks[1], D_VIS, D_H) * (1.0 / P)   # fold mean-pool 1/P into wp1
    wp2 = dense(ks[2], D_H, D_LLM)
    wf1 = dense(ks[3], D_LLM, D_FF)
    wf2 = dense(ks[4], D_FF, D_LLM)
    wh  = dense(ks[5], D_LLM, VOCAB)

    # Two packed bf16 weight blocks (2 DMAs instead of 6):
    #   WA (256, 256) = lane-concat [wv | wf2]
    #   WB (384, 256) = row-stack  [[wp1 | wp2]; wf1; wh]
    wa = jnp.concatenate([wv, wf2], axis=1).astype(jnp.bfloat16)
    wb = jnp.concatenate(
        [jnp.concatenate([wp1, wp2], axis=1), wf1, wh], axis=0).astype(jnp.bfloat16)

    # One packed (8, 256) f32 block of per-feature vectors (1 DMA instead of 2/10):
    # row 0: [bv | bp1], row 1: [bp2 | g1], row 2: [be1 | bf2], row 3: [g2 | be2],
    # row 4: bf1, row 5: bh, rows 6-7: pad.  Biases zero, LN gammas one.
    vec = jnp.zeros((8, 2 * D_LLM), jnp.float32)
    vec = vec.at[1, D_LLM:2 * D_LLM].set(1.0)    # g1
    vec = vec.at[3, 0:D_LLM].set(1.0)            # g2

    return (wa, wb, vec)


def lame_forward(x, params):
    """x: (B, C, H, W) NCHW float32 -> logits (B, 1, VOCAB)."""
    wa, wb, vec = params
    b = x.shape[0]
    n_groups = pl.cdiv(b, B_PAD)                 # image groups of B_PAD rows each
    b_tot = n_groups * B_PAD

    # patchify (glue): NCHW -> (b, P, K1), feature axis (K1) kept contiguous
    xp = x.reshape(b, C, H // PATCH, PATCH, W // PATCH, PATCH)
    xp = jnp.transpose(xp, (0, 2, 4, 1, 3, 5)).reshape(b, P, K1)
    # pad batch to whole groups; padded rows are sliced off after the kernel
    xp = jnp.pad(xp, ((0, b_tot - b), (0, 0), (0, 0)))
    # group-major, patch-major within a group: row = (g, p, b_local) so the
    # in-kernel mean-pool slices full (8,128) vregs; ship as bf16 (halved DMA,
    # no in-kernel cast; feeds a bf16 MXU matmul so precision is unchanged).
    xp = xp.reshape(n_groups, B_PAD, P, K1).transpose(0, 2, 1, 3)
    xp = xp.reshape(n_groups * P * B_PAD, K1).astype(jnp.bfloat16)

    # cost estimate kept in sync with bf16 patches / packed parameter layout
    flops = 2 * n_groups * (
        B_PAD * P * K1 * D_VIS
        + B_PAD * (D_VIS * D_H + D_H * D_LLM
                   + D_LLM * D_FF + D_FF * D_LLM + D_LLM * VOCAB))
    transcendentals = n_groups * (B_PAD * (D_H + D_FF) + 2 * B_PAD)
    bytes_accessed = (n_groups * P * B_PAD * K1 * 2          # bf16 patches
                      + wa.size * 2 + wb.size * 2            # bf16 packed weights
                      + vec.size * 4                         # f32 packed vectors
                      + n_groups * B_PAD * VOCAB * 4)        # f32 output
    cost = pl.CostEstimate(flops=flops, transcendentals=transcendentals,
                           bytes_accessed=bytes_accessed)

    grid_spec = pltpu.PrefetchScalarGridSpec(
        num_scalar_prefetch=0,
        grid=(n_groups,),
        in_specs=[
            pl.BlockSpec((P * B_PAD, K1), lambda g: (g, 0)),   # per-group patches
            pl.BlockSpec(wa.shape, lambda g: (0, 0)),          # VMEM-resident weights
            pl.BlockSpec(wb.shape, lambda g: (0, 0)),
            pl.BlockSpec(vec.shape, lambda g: (0, 0)),
        ],
        out_specs=pl.BlockSpec((B_PAD, VOCAB), lambda g: (g, 0)),
    )

    logits = pl.pallas_call(
        lame_kernel,
        out_shape=jax.ShapeDtypeStruct((b_tot, VOCAB), jnp.float32),
        grid_spec=grid_spec,
        compiler_params=pltpu.CompilerParams(
            dimension_semantics=("parallel",)),                # v7x: 2 TCs
        cost_estimate=cost,
    )(xp, wa, wb, vec)

    # drop batch padding and re-insert the seq dim of 1 from .unsqueeze(1)
    return logits[:b, None, :]


if __name__ == "__main__":
    key = jax.random.PRNGKey(0)
    k_x, k_p = jax.random.split(key)
    x = jax.random.normal(k_x, (B, C, H, W), jnp.float32)
    params = init_params(k_p)

    out = jax.jit(lame_forward)(x, params)
    out = jax.block_until_ready(out)
    assert out.shape == (B, 1, VOCAB), out.shape
    assert jnp.all(jnp.isfinite(out))
    print("KERNEL_OK")
</pallas_src>

<mosaic_0001>
module attributes {stable_mosaic.version = 11 : i64} {
  func.func @lame_kernel(%arg0: i32, %arg1: memref<32x256xbf16, #tpu.memory_space<vmem>>, %arg2: memref<256x256xbf16, #tpu.memory_space<vmem>>, %arg3: memref<384x256xbf16, #tpu.memory_space<vmem>>, %arg4: memref<8x256xf32, #tpu.memory_space<vmem>>, %arg5: memref<8x256xf32, #tpu.memory_space<vmem>>) attributes {dimension_semantics = [#tpu.dimension_semantics<parallel>], iteration_bounds = array<i64: 1>, scalar_prefetch = 0 : i64, scratch_operands = 0 : i64, tpu.core_type = #tpu.core_type<tc>, window_params = [{transform_indices = @transform_0, window_bounds = array<i64: 32, 256>}, {pipeline_mode = #tpu.pipeline_mode<synchronous>, transform_indices = @transform_1, window_bounds = array<i64: 256, 256>}, {pipeline_mode = #tpu.pipeline_mode<synchronous>, transform_indices = @transform_2, window_bounds = array<i64: 384, 256>}, {pipeline_mode = #tpu.pipeline_mode<synchronous>, transform_indices = @transform_3, window_bounds = array<i64: 8, 256>}, {transform_indices = @transform_4, window_bounds = array<i64: 8, 256>}]} {
    %c0 = arith.constant 0 : index
    %c0_0 = arith.constant 0 : index
    %0 = vector.load %arg2[%c0, %c0_0] : memref<256x256xbf16, #tpu.memory_space<vmem>>, vector<256x256xbf16>
    %c0_1 = arith.constant 0 : index
    %c0_2 = arith.constant 0 : index
    %1 = vector.load %arg3[%c0_1, %c0_2] : memref<384x256xbf16, #tpu.memory_space<vmem>>, vector<384x256xbf16>
    %2 = vector.extract_strided_slice %0 {offsets = [0, 0], sizes = [256, 128], strides = [1, 1]} : vector<256x256xbf16> to vector<256x128xbf16>
    %3 = vector.extract_strided_slice %0 {offsets = [0, 128], sizes = [256, 128], strides = [1, 1]} : vector<256x256xbf16> to vector<256x128xbf16>
    %4 = vector.extract_strided_slice %1 {offsets = [0, 0], sizes = [128, 128], strides = [1, 1]} : vector<384x256xbf16> to vector<128x128xbf16>
    %5 = vector.extract_strided_slice %1 {offsets = [0, 128], sizes = [128, 128], strides = [1, 1]} : vector<384x256xbf16> to vector<128x128xbf16>
    %6 = vector.extract_strided_slice %1 {offsets = [128, 0], sizes = [128, 256], strides = [1, 1]} : vector<384x256xbf16> to vector<128x256xbf16>
    %7 = vector.extract_strided_slice %1 {offsets = [256, 0], sizes = [128, 256], strides = [1, 1]} : vector<384x256xbf16> to vector<128x256xbf16>
    %c0_3 = arith.constant 0 : index
    %c0_4 = arith.constant 0 : index
    %8 = vector.load %arg4[%c0_3, %c0_4] : memref<8x256xf32, #tpu.memory_space<vmem>>, vector<8x256xf32>
    %9 = vector.extract_strided_slice %8 {offsets = [0, 0], sizes = [1, 128], strides = [1, 1]} : vector<8x256xf32> to vector<1x128xf32>
    %10 = vector.extract_strided_slice %8 {offsets = [0, 128], sizes = [1, 128], strides = [1, 1]} : vector<8x256xf32> to vector<1x128xf32>
    %11 = vector.extract_strided_slice %8 {offsets = [1, 0], sizes = [1, 128], strides = [1, 1]} : vector<8x256xf32> to vector<1x128xf32>
    %12 = vector.extract_strided_slice %8 {offsets = [1, 128], sizes = [1, 128], strides = [1, 1]} : vector<8x256xf32> to vector<1x128xf32>
    %13 = vector.extract_strided_slice %8 {offsets = [2, 0], sizes = [1, 128], strides = [1, 1]} : vector<8x256xf32> to vector<1x128xf32>
    %14 = vector.extract_strided_slice %8 {offsets = [2, 128], sizes = [1, 128], strides = [1, 1]} : vector<8x256xf32> to vector<1x128xf32>
    %15 = vector.extract_strided_slice %8 {offsets = [3, 0], sizes = [1, 128], strides = [1, 1]} : vector<8x256xf32> to vector<1x128xf32>
    %16 = vector.extract_strided_slice %8 {offsets = [3, 128], sizes = [1, 128], strides = [1, 1]} : vector<8x256xf32> to vector<1x128xf32>
    %17 = vector.extract_strided_slice %8 {offsets = [4, 0], sizes = [1, 256], strides = [1, 1]} : vector<8x256xf32> to vector<1x256xf32>
    %18 = vector.extract_strided_slice %8 {offsets = [5, 0], sizes = [1, 256], strides = [1, 1]} : vector<8x256xf32> to vector<1x256xf32>
    %c0_5 = arith.constant 0 : index
    %c0_6 = arith.constant 0 : index
    %19 = vector.load %arg1[%c0_5, %c0_6] : memref<32x256xbf16, #tpu.memory_space<vmem>>, vector<32x256xbf16>
    %cst = arith.constant dense<0.000000e+00> : vector<32x128xf32>
    %20 = tpu.matmul %19, %2, %cst {dimension_numbers = #tpu.dot_dimension_numbers<[1], [0], [0], [1], [0, 0, 1, 1], [], []>} : vector<32x256xbf16>, vector<256x128xbf16>, vector<32x128xf32> -> vector<32x128xf32>
    %21 = vector.broadcast %9 : vector<1x128xf32> to vector<32x128xf32>
    %22 = arith.addf %20, %21 : vector<32x128xf32>
    %cst_7 = arith.constant 0.000000e+00 : f32
    %23 = vector.broadcast %cst_7 : f32 to vector<32x128xf32>
    %24 = arith.maximumf %22, %23 : vector<32x128xf32>
    %25 = vector.extract_strided_slice %24 {offsets = [0, 0], sizes = [8, 128], strides = [1, 1]} : vector<32x128xf32> to vector<8x128xf32>
    %26 = vector.extract_strided_slice %24 {offsets = [8, 0], sizes = [8, 128], strides = [1, 1]} : vector<32x128xf32> to vector<8x128xf32>
    %27 = arith.addf %25, %26 : vector<8x128xf32>
    %28 = vector.extract_strided_slice %24 {offsets = [16, 0], sizes = [8, 128], strides = [1, 1]} : vector<32x128xf32> to vector<8x128xf32>
    %29 = arith.addf %27, %28 : vector<8x128xf32>
    %30 = vector.extract_strided_slice %24 {offsets = [24, 0], sizes = [8, 128], strides = [1, 1]} : vector<32x128xf32> to vector<8x128xf32>
    %31 = arith.addf %29, %30 : vector<8x128xf32>
    %32 = arith.truncf %31 : vector<8x128xf32> to vector<8x128xbf16>
    %cst_8 = arith.constant dense<0.000000e+00> : vector<8x128xf32>
    %33 = tpu.matmul %32, %4, %cst_8 {dimension_numbers = #tpu.dot_dimension_numbers<[1], [0], [0], [1], [0, 0, 1, 1], [], []>} : vector<8x128xbf16>, vector<128x128xbf16>, vector<8x128xf32> -> vector<8x128xf32>
    %34 = vector.broadcast %10 : vector<1x128xf32> to vector<8x128xf32>
    %35 = arith.addf %33, %34 : vector<8x128xf32>
    %36 = arith.mulf %35, %35 : vector<8x128xf32>
    %37 = arith.mulf %35, %36 : vector<8x128xf32>
    %cst_9 = arith.constant 4.471500e-02 : f32
    %38 = vector.broadcast %cst_9 : f32 to vector<8x128xf32>
    %39 = arith.mulf %38, %37 : vector<8x128xf32>
    %40 = arith.addf %35, %39 : vector<8x128xf32>
    %cst_10 = arith.constant 0.797884583 : f32
    %41 = vector.broadcast %cst_10 : f32 to vector<8x128xf32>
    %42 = arith.mulf %41, %40 : vector<8x128xf32>
    %43 = math.tanh %42 : vector<8x128xf32>
    %cst_11 = arith.constant 1.000000e+00 : f32
    %44 = vector.broadcast %cst_11 : f32 to vector<8x128xf32>
    %45 = arith.addf %44, %43 : vector<8x128xf32>
    %cst_12 = arith.constant 5.000000e-01 : f32
    %46 = vector.broadcast %cst_12 : f32 to vector<8x128xf32>
    %47 = arith.mulf %46, %45 : vector<8x128xf32>
    %48 = arith.mulf %35, %47 : vector<8x128xf32>
    %49 = arith.truncf %48 : vector<8x128xf32> to vector<8x128xbf16>
    %cst_13 = arith.constant dense<0.000000e+00> : vector<8x128xf32>
    %50 = tpu.matmul %49, %5, %cst_13 {dimension_numbers = #tpu.dot_dimension_numbers<[1], [0], [0], [1], [0, 0, 1, 1], [], []>} : vector<8x128xbf16>, vector<128x128xbf16>, vector<8x128xf32> -> vector<8x128xf32>
    %51 = vector.broadcast %11 : vector<1x128xf32> to vector<8x128xf32>
    %52 = arith.addf %50, %51 : vector<8x128xf32>
    %cst_14 = arith.constant dense<0.000000e+00> : vector<8xf32>
    %53 = vector.multi_reduction <add>, %52, %cst_14 [1] : vector<8x128xf32> to vector<8xf32>
    %54 = vector.shape_cast %53 : vector<8xf32> to vector<8x1xf32>
    %cst_15 = arith.constant 1.280000e+02 : f32
    %55 = vector.broadcast %cst_15 : f32 to vector<8x1xf32>
    %56 = arith.divf %54, %55 : vector<8x1xf32>
    %57 = vector.broadcast %56 : vector<8x1xf32> to vector<8x128xf32>
    %58 = arith.subf %52, %57 : vector<8x128xf32>
    %59 = arith.mulf %58, %58 : vector<8x128xf32>
    %cst_16 = arith.constant dense<0.000000e+00> : vector<8xf32>
    %60 = vector.multi_reduction <add>, %59, %cst_16 [1] : vector<8x128xf32> to vector<8xf32>
    %61 = vector.shape_cast %60 : vector<8xf32> to vector<8x1xf32>
    %cst_17 = arith.constant 1.280000e+02 : f32
    %62 = vector.broadcast %cst_17 : f32 to vector<8x1xf32>
    %63 = arith.divf %61, %62 : vector<8x1xf32>
    %64 = vector.broadcast %56 : vector<8x1xf32> to vector<8x128xf32>
    %65 = arith.subf %52, %64 : vector<8x128xf32>
    %cst_18 = arith.constant 9.99999974E-6 : f32
    %66 = vector.broadcast %cst_18 : f32 to vector<8x1xf32>
    %67 = arith.addf %63, %66 : vector<8x1xf32>
    %68 = math.rsqrt %67 : vector<8x1xf32>
    %69 = vector.broadcast %68 : vector<8x1xf32> to vector<8x128xf32>
    %70 = arith.mulf %65, %69 : vector<8x128xf32>
    %71 = vector.broadcast %12 : vector<1x128xf32> to vector<8x128xf32>
    %72 = arith.mulf %70, %71 : vector<8x128xf32>
    %73 = vector.broadcast %13 : vector<1x128xf32> to vector<8x128xf32>
    %74 = arith.addf %72, %73 : vector<8x128xf32>
    %75 = arith.truncf %74 : vector<8x128xf32> to vector<8x128xbf16>
    %cst_19 = arith.constant dense<0.000000e+00> : vector<8x256xf32>
    %76 = tpu.matmul %75, %6, %cst_19 {dimension_numbers = #tpu.dot_dimension_numbers<[1], [0], [0], [1], [0, 0, 1, 1], [], []>} : vector<8x128xbf16>, vector<128x256xbf16>, vector<8x256xf32> -> vector<8x256xf32>
    %77 = vector.broadcast %17 : vector<1x256xf32> to vector<8x256xf32>
    %78 = arith.addf %76, %77 : vector<8x256xf32>
    %79 = arith.mulf %78, %78 : vector<8x256xf32>
    %80 = arith.mulf %78, %79 : vector<8x256xf32>
    %cst_20 = arith.constant 4.471500e-02 : f32
    %81 = vector.broadcast %cst_20 : f32 to vector<8x256xf32>
    %82 = arith.mulf %81, %80 : vector<8x256xf32>
    %83 = arith.addf %78, %82 : vector<8x256xf32>
    %cst_21 = arith.constant 0.797884583 : f32
    %84 = vector.broadcast %cst_21 : f32 to vector<8x256xf32>
    %85 = arith.mulf %84, %83 : vector<8x256xf32>
    %86 = math.tanh %85 : vector<8x256xf32>
    %cst_22 = arith.constant 1.000000e+00 : f32
    %87 = vector.broadcast %cst_22 : f32 to vector<8x256xf32>
    %88 = arith.addf %87, %86 : vector<8x256xf32>
    %cst_23 = arith.constant 5.000000e-01 : f32
    %89 = vector.broadcast %cst_23 : f32 to vector<8x256xf32>
    %90 = arith.mulf %89, %88 : vector<8x256xf32>
    %91 = arith.mulf %78, %90 : vector<8x256xf32>
    %92 = arith.truncf %91 : vector<8x256xf32> to vector<8x256xbf16>
    %cst_24 = arith.constant dense<0.000000e+00> : vector<8x128xf32>
    %93 = tpu.matmul %92, %3, %cst_24 {dimension_numbers = #tpu.dot_dimension_numbers<[1], [0], [0], [1], [0, 0, 1, 1], [], []>} : vector<8x256xbf16>, vector<256x128xbf16>, vector<8x128xf32> -> vector<8x128xf32>
    %94 = vector.broadcast %14 : vector<1x128xf32> to vector<8x128xf32>
    %95 = arith.addf %93, %94 : vector<8x128xf32>
    %96 = arith.addf %52, %95 : vector<8x128xf32>
    %cst_25 = arith.constant dense<0.000000e+00> : vector<8xf32>
    %97 = vector.multi_reduction <add>, %96, %cst_25 [1] : vector<8x128xf32> to vector<8xf32>
    %98 = vector.shape_cast %97 : vector<8xf32> to vector<8x1xf32>
    %cst_26 = arith.constant 1.280000e+02 : f32
    %99 = vector.broadcast %cst_26 : f32 to vector<8x1xf32>
    %100 = arith.divf %98, %99 : vector<8x1xf32>
    %101 = vector.broadcast %100 : vector<8x1xf32> to vector<8x128xf32>
    %102 = arith.subf %96, %101 : vector<8x128xf32>
    %103 = arith.mulf %102, %102 : vector<8x128xf32>
    %cst_27 = arith.constant dense<0.000000e+00> : vector<8xf32>
    %104 = vector.multi_reduction <add>, %103, %cst_27 [1] : vector<8x128xf32> to vector<8xf32>
    %105 = vector.shape_cast %104 : vector<8xf32> to vector<8x1xf32>
    %cst_28 = arith.constant 1.280000e+02 : f32
    %106 = vector.broadcast %cst_28 : f32 to vector<8x1xf32>
    %107 = arith.divf %105, %106 : vector<8x1xf32>
    %108 = vector.broadcast %100 : vector<8x1xf32> to vector<8x128xf32>
    %109 = arith.subf %96, %108 : vector<8x128xf32>
    %cst_29 = arith.constant 9.99999974E-6 : f32
    %110 = vector.broadcast %cst_29 : f32 to vector<8x1xf32>
    %111 = arith.addf %107, %110 : vector<8x1xf32>
    %112 = math.rsqrt %111 : vector<8x1xf32>
    %113 = vector.broadcast %112 : vector<8x1xf32> to vector<8x128xf32>
    %114 = arith.mulf %109, %113 : vector<8x128xf32>
    %115 = vector.broadcast %15 : vector<1x128xf32> to vector<8x128xf32>
    %116 = arith.mulf %114, %115 : vector<8x128xf32>
    %117 = vector.broadcast %16 : vector<1x128xf32> to vector<8x128xf32>
    %118 = arith.addf %116, %117 : vector<8x128xf32>
    %119 = arith.truncf %118 : vector<8x128xf32> to vector<8x128xbf16>
    %cst_30 = arith.constant dense<0.000000e+00> : vector<8x256xf32>
    %120 = tpu.matmul %119, %7, %cst_30 {dimension_numbers = #tpu.dot_dimension_numbers<[1], [0], [0], [1], [0, 0, 1, 1], [], []>} : vector<8x128xbf16>, vector<128x256xbf16>, vector<8x256xf32> -> vector<8x256xf32>
    %121 = vector.broadcast %18 : vector<1x256xf32> to vector<8x256xf32>
    %122 = arith.addf %120, %121 : vector<8x256xf32>
    %c0_31 = arith.constant 0 : index
    %c0_32 = arith.constant 0 : index
    %123 = vector.load %arg5[%c0_31, %c0_32] : memref<8x256xf32, #tpu.memory_space<vmem>>, vector<8x256xf32>
    tpu.vector_store %arg5[%c0_31, %c0_32], %122 {strides = array<i32>} : memref<8x256xf32, #tpu.memory_space<vmem>>, vector<8x256xf32>,
    return
  }
  func.func @transform_0(%arg0: i32) -> (i32, i32) {
    %c0_i32 = arith.constant 0 : i32
    %c0_i32_0 = arith.constant 0 : i32
    return %arg0, %c0_i32 : i32, i32
  }
  func.func @transform_1(%arg0: i32) -> (i32, i32) {
    %c0_i32 = arith.constant 0 : i32
    %c0_i32_0 = arith.constant 0 : i32
    %c0_i32_1 = arith.constant 0 : i32
    return %c0_i32, %c0_i32_0 : i32, i32
  }
  func.func @transform_2(%arg0: i32) -> (i32, i32) {
    %c0_i32 = arith.constant 0 : i32
    %c0_i32_0 = arith.constant 0 : i32
    %c0_i32_1 = arith.constant 0 : i32
    return %c0_i32, %c0_i32_0 : i32, i32
  }
  func.func @transform_3(%arg0: i32) -> (i32, i32) {
    %c0_i32 = arith.constant 0 : i32
    %c0_i32_0 = arith.constant 0 : i32
    %c0_i32_1 = arith.constant 0 : i32
    return %c0_i32, %c0_i32_0 : i32, i32
  }
  func.func @transform_4(%arg0: i32) -> (i32, i32) {
    %c0_i32 = arith.constant 0 : i32
    %c0_i32_0 = arith.constant 0 : i32
    return %arg0, %c0_i32 : i32, i32
  }
}

</mosaic_0001>

<bundles_post_ra>
// kernel: lame_forward.1
= control target key start
LH: loop header
LB: loop body
LE: loop exit
PB: predicated region body
PF: predicated region fallthrough
CT: control target
= control target key end

     0   :  { %v1228_v1 = vmov 0.0   ;;  %vm1229_vm0 = vmmov 0   ;;  %v104_v38 = vlaneseq  ;;  %s1571_s1 = inlined_call_operand.vmem [shape: bf16[256,256], index: 1, kind: input, shape index: {}]   ;;  %s1572_s0 = inlined_call_operand.vmem [shape: bf16[32,256], index: 0, kind: input, shape index: {}]   ;;  %s1573_s2 = inlined_call_operand.vmem [shape: bf16[384,256], index: 2, kind: input, shape index: {}]   ;;  %s1574_s3 = inlined_call_operand.vmem [shape: f32[8,256], index: 3, kind: input, shape index: {}]   ;;  %s1575_s4 = inlined_call_operand.vmem [shape: f32[8,256], index: 4, kind: output, shape index: {}]  }
   0x1   :  { %v1092_v0 = vld [vmem:[%s1571_s1 + $0xf0] ss:$8 sps:$4 sm:$0xff]   ;;  %1049 = vmatprep.subr.bf16.mxu1 %v1228_v1  ;;  %v1098_v3 = vld [vmem:[%s1571_s1 + $0xe0] ss:$8 sps:$4 sm:$0xff]   ;;  %v1135_v13 = vld [vmem:[%s1572_s0 + $0x4] ss:$8 sps:$4 sm:$0xff]   ;;  %1065 = vmatprep.mubr.msk.bf16.mxu1 %vm1229_vm0, %v1228_v1 }
   0x2   :  { %981 = vmatprep.subr.bf16.mxu0 %v1092_v0  ;;  %v1095_v2 = vld [vmem:[%s1571_s1 + $0x70] ss:$8 sps:$4 sm:$0xff]   ;;  %v1100_v4 = vld [vmem:[%s1571_s1 + $0x60] ss:$8 sps:$4 sm:$0xff]   ;;  %256 = vmatprep.mubr.bf16.mxu0 %v1135_v13  ;;  %v1136_v21 = vld [vmem:[%s1572_s0 + $0x14] ss:$8 sps:$4 sm:$0xff]  }
   0x3   :  { %982 = vmatpush3.bf16.msra.mxu0 %v1095_v2  ;;  %v1103_v5 = vld [vmem:[%s1571_s1 + $0xd0] ss:$8 sps:$4 sm:$0xff]   ;;  %v1108_v7 = vld [vmem:[%s1571_s1 + $0xc0] ss:$8 sps:$4 sm:$0xff]   ;;  %v1141_v22 = vld [vmem:[%s1573_s2 + $0x74] ss:$8 sps:$4 sm:$0xff]  }
   0x4   :  { %983 = vmatprep.subr.bf16.mxu0 %v1098_v3  ;;  %v1105_v6 = vld [vmem:[%s1571_s1 + $0x50] ss:$8 sps:$4 sm:$0xff]   ;;  %v1110_v8 = vld [vmem:[%s1571_s1 + $0x40] ss:$8 sps:$4 sm:$0xff]   ;;  %v1144_v23 = vld [vmem:[%s1573_s2 + $0x64] ss:$8 sps:$4 sm:$0xff]  }
   0x5   :  { %v1113_v9 = vld [vmem:[%s1571_s1 + $0xb0] ss:$8 sps:$4 sm:$0xff]   ;;  %v1118_v11 = vld [vmem:[%s1571_s1 + $0xa0] ss:$8 sps:$4 sm:$0xff]   ;;  %v1147_v27 = vld [vmem:[%s1573_s2 + $0x54] ss:$8 sps:$4 sm:$0xff]  }
   0x6   :  { %v1115_v10 = vld [vmem:[%s1571_s1 + $0x30] ss:$8 sps:$4 sm:$0xff]   ;;  %v1120_v12 = vld [vmem:[%s1571_s1 + $0x20] ss:$8 sps:$4 sm:$0xff]   ;;  %v1150_v30 = vld [vmem:[%s1573_s2 + $0x44] ss:$8 sps:$4 sm:$0xff]  }
   0x7   :  { %984 = vmatpush3.bf16.msra.mxu0 %v1100_v4  ;;  %v1123_v14 = vld [vmem:[%s1571_s1 + $0x90] ss:$8 sps:$4 sm:$0xff]   ;;  %v1128_v17 = vld [vmem:[%s1571_s1 + $0x80] ss:$8 sps:$4 sm:$0xff]   ;;  %v1153_v32 = vld [vmem:[%s1573_s2 + $0x34] ss:$8 sps:$4 sm:$0xff]  }
   0x8   :  { %985 = vmatprep.subr.bf16.mxu0 %v1103_v5  ;;  %v1125_v15 = vld [vmem:[%s1571_s1 + $0x10] ss:$8 sps:$4 sm:$0xff]   ;;  %v1142_v18 = vld [vmem:[%s1573_s2 + $0x60] ss:$8 sps:$4 sm:$0xff]   ;;  %v1156_v33 = vld [vmem:[%s1573_s2 + $0x24] ss:$8 sps:$4 sm:$0xff]  }
   0x9   :  { %v1139_v16 = vld [vmem:[%s1573_s2 + $0x70] ss:$8 sps:$4 sm:$0xff]   ;;  %v1130_v19 = vld [vmem:[%s1571_s1] ss:$8 sps:$4 sm:$0xff]   ;;  %v1159_v35 = vld [vmem:[%s1573_s2 + $0x14] ss:$8 sps:$4 sm:$0xff]  }
   0xa   :  { %1050 = vmatpush3.bf16.msra.mxu1 %v1139_v16  ;;  %v1133_v20 = vld [vmem:[%s1572_s0] ss:$8 sps:$4 sm:$0xff]   ;;  %v1138_v24 = vld [vmem:[%s1572_s0 + $0x10] ss:$8 sps:$4 sm:$0xff]   ;;  %v1162_v36 = vld [vmem:[%s1573_s2 + $0x4] ss:$8 sps:$4 sm:$0xff]  }
   0xb   :  { %986 = vmatpush3.bf16.msra.mxu0 %v1105_v6  ;;  %1051 = vmatprep.subr.bf16.mxu1 %v1228_v1  ;;  %v1145_v25 = vld [vmem:[%s1573_s2 + $0x50] ss:$8 sps:$4 sm:$0xff]   ;;  %v1148_v26 = vld [vmem:[%s1573_s2 + $0x40] ss:$8 sps:$4 sm:$0xff]   ;;  %v1094_v37 = vld [vmem:[%s1571_s1 + $0xf4] ss:$8 sps:$4 sm:$0xff]  }
   0xc   :  { %987 = vmatprep.subr.bf16.mxu0 %v1108_v7  ;;  %v1151_v28 = vld [vmem:[%s1573_s2 + $0x30] ss:$8 sps:$4 sm:$0xff]   ;;  %v1154_v29 = vld [vmem:[%s1573_s2 + $0x20] ss:$8 sps:$4 sm:$0xff]   ;;  %v1385_v39 = vshrl.u32 %v104_v38, 7 }
   0xd   :  { %v1157_v31 = vld [vmem:[%s1573_s2 + $0x10] ss:$8 sps:$4 sm:$0xff]   ;;  %v1160_v34 = vld [vmem:[%s1573_s2] ss:$8 sps:$4 sm:$0xff]  }
   0xe   :  { %1052 = vmatpush3.bf16.msra.mxu1 %v1142_v18  ;;  %v106_v42 = vsub.s32 0, %v1385_v39  ;;  %v1391_v43 = vld [vmem:[%s1574_s3] sm:$0xff]  ;;  %v1397_v3 = vld [vmem:[%s1574_s3 + $0x8] sm:$0xff] }
   0xf   :  { %988 = vmatpush3.bf16.msra.mxu0 %v1110_v8  ;;  %1053 = vmatprep.subr.bf16.mxu1 %v1228_v1  ;;  %v1172_v38 = vld [vmem:[%s1573_s2 + $0xc0] ss:$8 sps:$4 sm:$0xff]  }
  0x10   :  { %989 = vmatprep.subr.bf16.mxu0 %v1113_v9  ;;  %v107_v46 = vrot.slane %v1391_v43, %v106_v42  ;;  %v284_v4 = vrot.slane %v1397_v3, %v106_v42  ;;  %v1175_v42 = vld [vmem:[%s1573_s2 + $0xb0] ss:$8 sps:$4 sm:$0xff]  }
  0x12   :  { %1054 = vmatpush3.bf16.msra.mxu1 %v1145_v25 }
  0x13   :  { %990 = vmatpush3.bf16.msra.mxu0 %v1115_v10  ;;  %1055 = vmatprep.subr.bf16.mxu1 %v1228_v1 }
  0x14   :  { %991 = vmatprep.subr.bf16.mxu0 %v1118_v11 }
  0x16   :  { %1056 = vmatpush3.bf16.msra.mxu1 %v1148_v26 }
  0x17   :  { %992 = vmatpush3.bf16.msra.mxu0 %v1120_v12  ;;  %1057 = vmatprep.subr.bf16.mxu1 %v1228_v1 }
  0x18   :  { %993 = vmatprep.subr.bf16.mxu0 %v1123_v14 }
  0x1a   :  { %1058 = vmatpush3.bf16.msra.mxu1 %v1151_v28  ;;  %v1163_v28 = vld [vmem:[%s1573_s2 + $0xf0] ss:$8 sps:$4 sm:$0xff]  }
  0x1b   :  { %994 = vmatpush3.bf16.msra.mxu0 %v1125_v15  ;;  %1059 = vmatprep.subr.bf16.mxu1 %v1228_v1 }
  0x1c   :  { %995 = vmatprep.subr.bf16.mxu0 %v1128_v17 }
  0x1e   :  { %1060 = vmatpush3.bf16.msra.mxu1 %v1154_v29  ;;  %v1165_v29 = vld [vmem:[%s1573_s2 + $0xf4] ss:$8 sps:$4 sm:$0xff]  }
  0x1f   :  { %996 = vmatpush3.bf16.msra.mxu0 %v1130_v19  ;;  %1061 = vmatprep.subr.bf16.mxu1 %v1228_v1  ;;  %v1097_v19 = vld [vmem:[%s1571_s1 + $0x74] ss:$8 sps:$4 sm:$0xff]  }
  0x20   :  { %1069 = vmatprep.subr.bf16.mxu0 %v1228_v1 }
  0x22   :  { %257 = vmatmul.mubr.bf16.vlgmr.msra.gmra.mxu0 %v1133_v20  ;;  %1062 = vmatpush3.bf16.msra.mxu1 %v1157_v31  ;;  %v1166_v31 = vld [vmem:[%s1573_s2 + $0xe0] ss:$8 sps:$4 sm:$0xff]  }
  0x23   :  { %264 = vmatprep.mubr.bf16.mxu0 %v1136_v21  ;;  %1070 = vmatpush3.bf16.msra.mxu0 %v1141_v22  ;;  %v385_v21 = vsub.s32 1, %v1385_v39 }
  0x24   :  { %1071 = vmatprep.subr.bf16.mxu0 %v1228_v1  ;;  %1063 = vmatprep.subr.bf16.mxu1 %v1228_v1 }
  0x25   :  { %v386_v22 = vrot.slane %v1391_v43, %v385_v21 }
  0x26   :  { %1064 = vmatpush3.bf16.msra.mxu1 %v1160_v34 }
  0x27   :  { %1072 = vmatpush3.bf16.msra.mxu0 %v1144_v23  ;;  %570 = vmatprep.subr.bf16.mxu1 %v1165_v29 }
  0x28   :  { %1073 = vmatprep.subr.bf16.mxu0 %v1228_v1 }
  0x2a   :  { %265 = vmatmul.mubr.bf16.gmra.mxu0 %v1138_v24 }
  0x2b   :  { %1074 = vmatpush3.bf16.msra.mxu0 %v1147_v27  ;;  %1085 = vmatprep.mubr.msk.bf16.mxu0 %vm1229_vm0, %v1228_v1 }
  0x2c   :  { %1075 = vmatprep.subr.bf16.mxu0 %v1228_v1 }
  0x2f   :  { %1076 = vmatpush3.bf16.msra.mxu0 %v1150_v30  ;;  %v1168_v30 = vld [vmem:[%s1573_s2 + $0xe4] ss:$8 sps:$4 sm:$0xff]  }
  0x30   :  { %1077 = vmatprep.subr.bf16.mxu0 %v1228_v1 }
  0x33   :  { %1078 = vmatpush3.bf16.msra.mxu0 %v1153_v32 }
  0x34   :  { %1079 = vmatprep.subr.bf16.mxu0 %v1228_v1 }
  0x37   :  { %1080 = vmatpush3.bf16.msra.mxu0 %v1156_v33 }
  0x38   :  { %1081 = vmatprep.subr.bf16.mxu0 %v1228_v1 }
  0x3b   :  { %1082 = vmatpush3.bf16.msra.mxu0 %v1159_v35 }
  0x3c   :  { %1083 = vmatprep.subr.bf16.mxu0 %v1228_v1 }
  0x3f   :  { %1084 = vmatpush3.bf16.msra.mxu0 %v1162_v36  ;;  %v1171_v36 = vld [vmem:[%s1573_s2 + $0xd4] ss:$8 sps:$4 sm:$0xff]  }
  0x40   :  { %1027 = vmatprep.subr.bf16.mxu0 %v1094_v37  ;;  %v1169_v37 = vld [vmem:[%s1573_s2 + $0xd0] ss:$8 sps:$4 sm:$0xff]  }
  0xe2   :  { %v997_v40 = vpop.f32.mrf.mxu0 }
  0xe4   :  { %v998_v41 = vpop.f32.mrf.mxu0 }
  0xe5   :  { %v999_v47 = vadd.f32 %v998_v41, %v997_v40  ;;  %v1174_v40 = vld [vmem:[%s1573_s2 + $0xc4] ss:$8 sps:$4 sm:$0xff]   ;;  %v1177_v41 = vld [vmem:[%s1573_s2 + $0xb4] ss:$8 sps:$4 sm:$0xff]  }
  0xe6   :  { %v1000_v44 = vpop.f32.mrf.mxu0 }
  0xe7   :  { %v259_v52 = vadd.f32 %v999_v47, %v107_v46  ;;  %v1183_v47 = vld [vmem:[%s1573_s2 + $0x94] ss:$8 sps:$4 sm:$0xff]  }
  0xe8   :  { %v1001_v45 = vpop.f32.mrf.mxu0 }
  0xe9   :  { %v1002_v48 = vadd.f32 %v1001_v45, %v1000_v44  ;;  %v273_v58 = vmax.f32 %v259_v52, 0.0  ;;  %v1180_v44 = vld [vmem:[%s1573_s2 + $0xa4] ss:$8 sps:$4 sm:$0xff]   ;;  %v1230_v45 = vmov 0  }
  0xea   :  { %v1003_v49 = vpop.f32.mrf.mxu0 }
  0xeb   :  { %v262_v50 = vadd.f32 %v1002_v48, %v107_v46  ;;  %v1181_v48 = vld [vmem:[%s1573_s2 + $0x90] ss:$8 sps:$4 sm:$0xff]  }
  0xec   :  { %v1004_v51 = vpop.f32.mrf.mxu0 }
  0xed   :  { %v1005_v53 = vadd.f32 %v1004_v51, %v1003_v49  ;;  %v274_v55 = vmax.f32 %v262_v50, 0.0  ;;  %v1186_v49 = vld [vmem:[%s1573_s2 + $0x84] ss:$8 sps:$4 sm:$0xff]   ;;  %v1184_v50 = vld [vmem:[%s1573_s2 + $0x80] ss:$8 sps:$4 sm:$0xff]  }
  0xee   :  { %v1006_v54 = vpop.f32.mrf.mxu0 }
  0xef   :  { %v267_v56 = vadd.f32 %v1005_v53, %v107_v46  ;;  %v277_v61 = vadd.f32 %v274_v55, %v273_v58  ;;  %v474_v55 = vrot.slane %v1397_v3, %v385_v21 }
  0xf0   :  { %v1007_v57 = vpop.f32.mrf.mxu0 }
  0xf1   :  { %v275_v59 = vmax.f32 %v267_v56, 0.0  ;;  %v1008_v60 = vadd.f32 %v1007_v57, %v1006_v54  ;;  %v478_v54 = vsub.s32 2, %v1385_v39 }
  0xf3   :  { %v270_v62 = vadd.f32 %v1008_v60, %v107_v46  ;;  %v278_v63 = vadd.f32 %v277_v61, %v275_v59  ;;  %v1178_v46 = vld [vmem:[%s1573_s2 + $0xa0] ss:$8 sps:$4 sm:$0xff]   ;;  %v479_v58 = vrot.slane %v1391_v43, %v478_v54 }
  0xf5   :  { %v276_v0 = vmax.f32 %v270_v62, 0.0  ;;  %v1102_v62 = vld [vmem:[%s1571_s1 + $0x64] ss:$8 sps:$4 sm:$0xff]  }
  0xf7   :  { %v279_v1 = vadd.f32 %v278_v63, %v276_v0  ;;  %v1187_v63 = vld [vmem:[%s1571_s1 + $0xe4] ss:$8 sps:$4 sm:$0xff]   ;;  %v1107_v0 = vld [vmem:[%s1571_s1 + $0x54] ss:$8 sps:$4 sm:$0xff]  }
  0xf9   :  { %v280_v2 = vpack.c.bf16 %v279_v1, %v279_v1  ;;  %v1188_v1 = vld [vmem:[%s1571_s1 + $0xd4] ss:$8 sps:$4 sm:$0xff]  }
  0xfb   :  { %1066 = vmatmul.mubr.bf16.vlgmr.msra.gmra.mxu1 %v280_v2  ;;  %v1112_v2 = vld [vmem:[%s1571_s1 + $0x44] ss:$8 sps:$4 sm:$0xff]  }
  0xfc   :  { %571 = vmatpush1.bf16.msra.mxu1 %v1163_v28  ;;  %602 = vmatprep.mubr.bf16.mxu1 %v1230_v45 }
  0xfd   :  { %572 = vmatprep.subr.bf16.mxu1 %v1168_v30 }
 0x100   :  { %573 = vmatpush1.bf16.msra.mxu1 %v1166_v31 }
 0x101   :  { %574 = vmatprep.subr.bf16.mxu1 %v1171_v36 }
 0x104   :  { %575 = vmatpush1.bf16.msra.mxu1 %v1169_v37 }
 0x105   :  { %576 = vmatprep.subr.bf16.mxu1 %v1174_v40 }
 0x108   :  { %577 = vmatpush1.bf16.msra.mxu1 %v1172_v38 }
 0x109   :  { %578 = vmatprep.subr.bf16.mxu1 %v1177_v41 }
 0x10c   :  { %579 = vmatpush1.bf16.msra.mxu1 %v1175_v42 }
 0x10d   :  { %580 = vmatprep.subr.bf16.mxu1 %v1180_v44 }
 0x110   :  { %581 = vmatpush1.bf16.msra.mxu1 %v1178_v46  ;;  %v634_v46 = vrot.slane %v1397_v3, %v478_v54  ;;  %v1199_v54 = vld [vmem:[%s1573_s2 + $0x164] ss:$8 sps:$4 sm:$0xff]  }
 0x111   :  { %582 = vmatprep.subr.bf16.mxu1 %v1183_v47 }
 0x114   :  { %583 = vmatpush1.bf16.msra.mxu1 %v1181_v48 }
 0x115   :  { %584 = vmatprep.subr.bf16.mxu1 %v1186_v49 }
 0x118   :  { %585 = vmatpush1.bf16.msra.mxu1 %v1184_v50 }
 0x1bb   :  { %v367_v5 = vpop.f32.mrf.mxu1 }
 0x1bc   :  { %v368_v6 = vadd.f32 %v367_v5, %v284_v4  ;;  %v1189_v4 = vld [vmem:[%s1571_s1 + $0xc4] ss:$8 sps:$4 sm:$0xff]   ;;  %v1190_v5 = vld [vmem:[%s1571_s1 + $0xb4] ss:$8 sps:$4 sm:$0xff]  }
 0x1bd   :  { %v1067_v7 = vpop.f32.mrf.mxu1 }
 0x1be   :  { %v373_v8 = vmul.f32 %v368_v6, %v368_v6  ;;  %v1191_v7 = vld [vmem:[%s1571_s1 + $0xa4] ss:$8 sps:$4 sm:$0xff]  }
 0x1bf   :  { %v370_v9 = vpop.f32.mrf.mxu1 }
 0x1c0   :  { %v374_v10 = vmul.f32 %v373_v8, %v368_v6  ;;  %v1122_v8 = vld [vmem:[%s1571_s1 + $0x24] ss:$8 sps:$4 sm:$0xff]   ;;  %v1192_v9 = vld [vmem:[%s1571_s1 + $0x94] ss:$8 sps:$4 sm:$0xff]  }
 0x1c1   :  { %v1068_v11 = vpop.f32.mrf.mxu1 }
 0x1c2   :  { %v375_v12 = vmul.f32 0.044715, %v374_v10  ;;  %v1127_v10 = vld [vmem:[%s1571_s1 + $0x14] ss:$8 sps:$4 sm:$0xff]   ;;  %v1193_v11 = vld [vmem:[%s1571_s1 + $0x84] ss:$8 sps:$4 sm:$0xff]  }
 0x1c4   :  { %v376_v13 = vadd.f32 %v375_v12, %v368_v6  ;;  %v1132_v12 = vld [vmem:[%s1571_s1 + $0x4] ss:$8 sps:$4 sm:$0xff]  }
 0x1c6   :  { %v377_v14 = vmul.f32 0.7978846, %v376_v13  ;;  %v484_v13 = vsub.s32 4, %v1385_v39 }
 0x1c8   :  { %1218 = vtanh.f32 %v377_v14  ;;  %v485_v14 = vrot.slane %v1391_v43, %v484_v13 }
 0x1d5   :  { %v1219_v15 = vpop.eup %1218 }
 0x1d6   :  { %v379_v16 = vadd.f32 1.0, %v1219_v15  ;;  %v489_v15 = vrot.slane %v1397_v3, %v484_v13 }
 0x1d8   :  { %v380_v17 = vmul.f32 0.5, %v379_v16 }
 0x1da   :  { %v381_v18 = vmul.f32 %v380_v17, %v368_v6  ;;  %v1117_v6 = vld [vmem:[%s1571_s1 + $0x34] ss:$8 sps:$4 sm:$0xff]  }
 0x1dc   :  { %v382_v20 = vpack.c.bf16 %v381_v18, %v381_v18 }
 0x1de   :  { %1086 = vmatmul.mubr.bf16.vlgmr.msra.gmra.mxu0 %v382_v20 }
 0x1df   :  { %1028 = vmatpush3.bf16.msra.mxu0 %v1097_v19 }
 0x1e0   :  { %1029 = vmatprep.subr.bf16.mxu0 %v1187_v63  ;;  %v1205_v63 = vld [vmem:[%s1573_s2 + $0x144] ss:$8 sps:$4 sm:$0xff]  }
 0x1e3   :  { %1030 = vmatpush3.bf16.msra.mxu0 %v1102_v62  ;;  %v1203_v62 = vld [vmem:[%s1573_s2 + $0x140] ss:$8 sps:$4 sm:$0xff]  }
 0x1e4   :  { %1031 = vmatprep.subr.bf16.mxu0 %v1188_v1  ;;  %v1206_v1 = vld [vmem:[%s1573_s2 + $0x130] ss:$8 sps:$4 sm:$0xff]  }
 0x1e7   :  { %1032 = vmatpush3.bf16.msra.mxu0 %v1107_v0  ;;  %v1208_v0 = vld [vmem:[%s1573_s2 + $0x134] ss:$8 sps:$4 sm:$0xff]  }
 0x1e8   :  { %1033 = vmatprep.subr.bf16.mxu0 %v1189_v4  ;;  %v1209_v4 = vld [vmem:[%s1573_s2 + $0x120] ss:$8 sps:$4 sm:$0xff]  }
 0x1eb   :  { %1034 = vmatpush3.bf16.msra.mxu0 %v1112_v2  ;;  %v1211_v2 = vld [vmem:[%s1573_s2 + $0x124] ss:$8 sps:$4 sm:$0xff]  }
 0x1ec   :  { %1035 = vmatprep.subr.bf16.mxu0 %v1190_v5  ;;  %v1214_v5 = vld [vmem:[%s1573_s2 + $0x114] ss:$8 sps:$4 sm:$0xff]  }
 0x1ef   :  { %1036 = vmatpush3.bf16.msra.mxu0 %v1117_v6  ;;  %v1212_v6 = vld [vmem:[%s1573_s2 + $0x110] ss:$8 sps:$4 sm:$0xff]  }
 0x1f0   :  { %1037 = vmatprep.subr.bf16.mxu0 %v1191_v7  ;;  %v1217_v7 = vld [vmem:[%s1573_s2 + $0x104] ss:$8 sps:$4 sm:$0xff]  }
 0x1f3   :  { %1038 = vmatpush3.bf16.msra.mxu0 %v1122_v8  ;;  %v1215_v8 = vld [vmem:[%s1573_s2 + $0x100] ss:$8 sps:$4 sm:$0xff]  }
 0x1f4   :  { %1039 = vmatprep.subr.bf16.mxu0 %v1192_v9 }
 0x1f7   :  { %1040 = vmatpush3.bf16.msra.mxu0 %v1127_v10 }
 0x1f8   :  { %1041 = vmatprep.subr.bf16.mxu0 %v1193_v11 }
 0x1fb   :  { %1042 = vmatpush3.bf16.msra.mxu0 %v1132_v12  ;;  %v753_v12 = vsub.s32 3, %v1385_v39 }
 0x1fd   :  { %v754_v13 = vrot.slane %v1391_v43, %v753_v12 }
 0x29e   :  { %v453_v23 = vpop.f32.mrf.mxu0 }
 0x29f   :  { %v1405_v24 = vadd.f32 %v453_v23, %v386_v22 }
 0x2a0   :  { %v1087_v25 = vpop.f32.mrf.mxu0 }
 0x2a1   :  { %459 = vadd.xlane.f32.xlu0 %v1405_v24 }
 0x2a2   :  { %v456_v26 = vpop.f32.mrf.mxu0 }
 0x2a4   :  { %v1088_v27 = vpop.f32.mrf.mxu0 }
 0x32a   :  { %v460_v32 = vpop.xlane.xlu0 %459 }
 0x32b   :  { %v462_v33 = vmul.f32 0.0078125, %v460_v32 }
 0x32d   :  { %v463_v34 = vsub.f32 %v1405_v24, %v462_v33 }
 0x32f   :  { %v464_v35 = vmul.f32 %v463_v34, %v463_v34 }
 0x331   :  { %465 = vadd.xlane.f32.xlu0 %v464_v35 }
 0x3ba   :  { %v466_v51 = vpop.xlane.xlu0 %465 }
 0x3bb   :  { %v467_v52 = vmul.f32 0.0078125, %v466_v51 }
 0x3bd   :  { %v468_v53 = vadd.f32 1e-05, %v467_v52 }
 0x3bf   :  { %1220 = vrsqrt.f32 %v468_v53  ;;  %v1194_v53 = vld [vmem:[%s1573_s2 + $0x170] ss:$8 sps:$4 sm:$0xff]  }
 0x3cc   :  { %v1221_v56 = vpop.eup %1220 }
 0x3cd   :  { %v470_v57 = vmul.f32 %v1221_v56, %v463_v34  ;;  %v1197_v56 = vld [vmem:[%s1573_s2 + $0x160] ss:$8 sps:$4 sm:$0xff]  }
 0x3cf   :  { %v475_v59 = vmul.f32 %v474_v55, %v470_v57  ;;  %v1196_v55 = vld [vmem:[%s1573_s2 + $0x174] ss:$8 sps:$4 sm:$0xff]  }
 0x3d0   :  { %850 = vmatprep.subr.bf16.mxu1 %v1196_v55 }
 0x3d1   :  { %v480_v60 = vadd.f32 %v479_v58, %v475_v59 }
 0x3d3   :  { %v481_v61 = vpack.c.bf16 %v480_v60, %v480_v60  ;;  %v1202_v60 = vld [vmem:[%s1573_s2 + $0x154] ss:$8 sps:$4 sm:$0xff]  }
 0x3d5   :  { %603 = vmatmul.mubr.bf16.vlgmr.msra.gmra.mxu1 %v481_v61  ;;  %v1200_v61 = vld [vmem:[%s1573_s2 + $0x150] ss:$8 sps:$4 sm:$0xff]  }
 0x3d6   :  { %882 = vmatprep.mubr.bf16.mxu1 %v1230_v45  ;;  %851 = vmatpush1.bf16.msra.mxu1 %v1194_v53 }
 0x3d7   :  { %852 = vmatprep.subr.bf16.mxu1 %v1199_v54 }
 0x3da   :  { %853 = vmatpush1.bf16.msra.mxu1 %v1197_v56 }
 0x3db   :  { %854 = vmatprep.subr.bf16.mxu1 %v1202_v60 }
 0x3de   :  { %855 = vmatpush1.bf16.msra.mxu1 %v1200_v61 }
 0x3df   :  { %856 = vmatprep.subr.bf16.mxu1 %v1205_v63 }
 0x3e2   :  { %857 = vmatpush1.bf16.msra.mxu1 %v1203_v62 }
 0x3e3   :  { %858 = vmatprep.subr.bf16.mxu1 %v1208_v0 }
 0x3e6   :  { %859 = vmatpush1.bf16.msra.mxu1 %v1206_v1 }
 0x3e7   :  { %860 = vmatprep.subr.bf16.mxu1 %v1211_v2 }
 0x3ea   :  { %861 = vmatpush1.bf16.msra.mxu1 %v1209_v4 }
 0x3eb   :  { %862 = vmatprep.subr.bf16.mxu1 %v1214_v5 }
 0x3ee   :  { %863 = vmatpush1.bf16.msra.mxu1 %v1212_v6 }
 0x3ef   :  { %864 = vmatprep.subr.bf16.mxu1 %v1217_v7 }
 0x3f2   :  { %865 = vmatpush1.bf16.msra.mxu1 %v1215_v8 }
 0x495   :  { %v604_v16 = vpop.f32.mrf.mxu1 }
 0x496   :  { %v605_v17 = vadd.f32 %v604_v16, %v485_v14  ;;  %v759_v16 = vrot.slane %v1397_v3, %v753_v12 }
 0x497   :  { %v606_v18 = vpop.f32.mrf.mxu1 }
 0x498   :  { %v611_v19 = vmul.f32 %v605_v17, %v605_v17  ;;  %v607_v20 = vadd.f32 %v606_v18, %v489_v15 }
 0x499   :  { %v608_v21 = vpop.f32.mrf.mxu1 }
 0x49a   :  { %v613_v22 = vmul.f32 %v611_v19, %v605_v17  ;;  %v612_v23 = vmul.f32 %v607_v20, %v607_v20 }
 0x49b   :  { %v609_v25 = vpop.f32.mrf.mxu1 }
 0x49c   :  { %v615_v26 = vmul.f32 0.044715, %v613_v22  ;;  %v614_v27 = vmul.f32 %v612_v23, %v607_v20 }
 0x49e   :  { %v617_v28 = vadd.f32 %v615_v26, %v605_v17  ;;  %v616_v29 = vmul.f32 0.044715, %v614_v27 }
 0x4a0   :  { %v619_v30 = vmul.f32 0.7978846, %v617_v28  ;;  %v618_v31 = vadd.f32 %v616_v29, %v607_v20 }
 0x4a2   :  { %1222 = vtanh.f32 %v619_v30  ;;  %v620_v32 = vmul.f32 0.7978846, %v618_v31 }
 0x4a4   :  { %1224 = vtanh.f32 %v620_v32 }
 0x4af   :  { %v1223_v33 = vpop.eup %1222 }
 0x4b0   :  { %v623_v34 = vadd.f32 1.0, %v1223_v33 }
 0x4b1   :  { %v1225_v35 = vpop.eup %1224 }
 0x4b2   :  { %v624_v36 = vadd.f32 1.0, %v1225_v35  ;;  %v625_v37 = vmul.f32 0.5, %v623_v34 }
 0x4b4   :  { %v626_v38 = vmul.f32 0.5, %v624_v36  ;;  %v627_v40 = vmul.f32 %v625_v37, %v605_v17 }
 0x4b6   :  { %v628_v41 = vmul.f32 %v626_v38, %v607_v20  ;;  %v629_v44 = vpack.c.bf16 %v627_v40, %v627_v40  ;;  %v764_v20 = vsub.s32 5, %v1385_v39 }
 0x4b8   :  { %v630_v42 = vpack.c.bf16 %v628_v41, %v628_v41  ;;  %v765_v21 = vrot.slane %v1391_v43, %v764_v20  ;;  %v769_v22 = vrot.slane %v1397_v3, %v764_v20 }
 0x4ba   :  { %731 = vmatprep.mubr.bf16.mxu0 %v630_v42 }
 0x4bb   :  { %732 = vmatmul.mubr.bf16.vlgmr.msra.gmra.mxu0 %v629_v44 }
 0x57b   :  { %v1043_v45 = vpop.f32.mrf.mxu0 }
 0x57d   :  { %v1044_v47 = vpop.f32.mrf.mxu0 }
 0x57e   :  { %v1045_v48 = vadd.f32 %v1044_v47, %v1043_v45 }
 0x57f   :  { %v1046_v49 = vpop.f32.mrf.mxu0 }
 0x580   :  { %v734_v50 = vadd.f32 %v1045_v48, %v634_v46 }
 0x581   :  { %v1047_v51 = vpop.f32.mrf.mxu0 }
 0x582   :  { %v739_v52 = vadd.f32 %v734_v50, %v1405_v24 }
 0x584   :  { %740 = vadd.xlane.f32.xlu1 %v739_v52 }
 0x60d   :  { %v741_v24 = vpop.xlane.xlu1 %740 }
 0x60e   :  { %v742_v57 = vmul.f32 0.0078125, %v741_v24 }
 0x610   :  { %v743_v58 = vsub.f32 %v739_v52, %v742_v57 }
 0x612   :  { %v744_v59 = vmul.f32 %v743_v58, %v743_v58 }
 0x614   :  { %745 = vadd.xlane.f32.xlu1 %v744_v59 }
 0x69d   :  { %v746_v9 = vpop.xlane.xlu1 %745 }
 0x69e   :  { %v747_v10 = vmul.f32 0.0078125, %v746_v9 }
 0x6a0   :  { %v748_v11 = vadd.f32 1e-05, %v747_v10 }
 0x6a2   :  { %1226 = vrsqrt.f32 %v748_v11 }
 0x6af   :  { %v1227_v14 = vpop.eup %1226 }
 0x6b0   :  { %v750_v15 = vmul.f32 %v1227_v14, %v743_v58 }
 0x6b2   :  { %v755_v17 = vmul.f32 %v754_v13, %v750_v15 }
 0x6b4   :  { %v760_v18 = vadd.f32 %v759_v16, %v755_v17 }
 0x6b6   :  { %v761_v19 = vpack.c.bf16 %v760_v18, %v760_v18 }
 0x6b8   :  { %883 = vmatmul.mubr.bf16.vlgmr.msra.gmra.mxu1 %v761_v19 }
 0x778   :  { %v884_v23 = vpop.f32.mrf.mxu1 }
 0x779   :  { %v885_v25 = vadd.f32 %v884_v23, %v765_v21 }
 0x77a   :  { %v886_v26 = vpop.f32.mrf.mxu1 }
 0x77b   :  { %891 = vst [vmem:[%s1575_s4] sm:$0xff] %v885_v25  ;;  %v887_v27 = vadd.f32 %v886_v26, %v769_v22 }
 0x77c   :  { %v888_v28 = vpop.f32.mrf.mxu1 }
 0x77d   :  { %892 = vst [vmem:[%s1575_s4 + $0x8] sm:$0xff] %v887_v27 }
 0x77e   :  { %v889_v29 = vpop.f32.mrf.mxu1 }

</bundles_post_ra>
